<compile_context>
chip_gen: v6e
topology: v6e:2x2x1
jax: 0.10.0
libtpu: 0.0.40
codegen_flags: <defaults>
</compile_context>

<pallas_src>
import jax
import jax.numpy as jnp
from jax.experimental import pallas as pl
from jax.experimental.pallas import tpu as pltpu

NEG_SLOPE = 0.01              # nn.LeakyReLU default
BN_EPS = 1e-5                 # nn.BatchNorm1d default
SUBLANE = 8
H1, H2 = 128, 256
VMEM_BUDGET_BYTES = 40 * 1024 * 1024   # tile-selection budget (fits all gens)
VMEM_LIMIT_BYTES = 48 * 1024 * 1024    # scoped limit (<= v7x 64 MiB physical)
MAX_TILE_N = 4096


def _round_up(x, m):
    return (x + m - 1) // m * m


def _leaky_relu(y):
    # slope in (0,1)  =>  LeakyReLU(y) == max(y, slope*y)
    return jnp.maximum(y, NEG_SLOPE * y)


def mlp_kernel(x_ref, w1_ref, t1_ref, w2_ref, t2_ref, w3_ref, b3_ref, out_ref):
    # Layer 1: Linear (BN scale pre-folded into w1) -> +shift -> LeakyReLU.
    x = x_ref[...].astype(jnp.bfloat16)             # cast in-kernel (no HBM pass)
    z1 = jnp.dot(x, w1_ref[...], preferred_element_type=jnp.float32)
    h1 = _leaky_relu(z1 + t1_ref[...])               # f32 VPU math

    # Layer 2.
    z2 = jnp.dot(h1.astype(jnp.bfloat16), w2_ref[...],
                 preferred_element_type=jnp.float32)
    h2 = _leaky_relu(z2 + t2_ref[...])

    # Layer 3: plain Linear.
    z3 = jnp.dot(h2.astype(jnp.bfloat16), w3_ref[...],
                 preferred_element_type=jnp.float32)
    out_ref[...] = (z3 + b3_ref[...]).astype(out_ref.dtype)


def _choose_tile_n(n, d_in, d_out):
    """Pick a batch tile: fit the VMEM budget, amortize per-step overhead,
    and keep >= 2 grid steps (v7x has 2 TensorCores) when the batch allows."""
    per_row = (2 * d_in * 4                      # f32 x tile, double-buffered
               + 2 * d_out * 4                   # f32 out tile, double-buffered
               + (H1 + H2 + d_out) * 4           # f32 intermediates
               + (H1 + H2) * 2)                  # bf16 copies of h1/h2
    weight_bytes = 2 * 2 * (d_in * H1 + H1 * H2 + H2 * d_out) \
        + 4 * (H1 + H2 + d_out)
    budget = max(VMEM_BUDGET_BYTES - weight_bytes, SUBLANE * per_row)
    t = min(budget // per_row, MAX_TILE_N)
    t = min(t, n)
    if n > 2 * SUBLANE:                          # allow both v7x TCs to work
        t = min(t, -(-n // 2))
    return int(max(SUBLANE, _round_up(t, SUBLANE)))


def experiment_condition_forward(x, folded_params):
    """Eval-mode forward.  x: (N, D_in) float32.  Returns (N, D_out) float32."""
    w1f, t1, w2f, t2, w3f, b3 = folded_params
    n, d_in = x.shape
    d_out = w3f.shape[1]

    tile_n = _choose_tile_n(n, d_in, d_out)
    grid = (pl.cdiv(n, tile_n),)                 # ragged last block is masked

    def const(shape):
        # Constant block index: weights/shifts stay VMEM-resident, DMA'd once.
        return pl.BlockSpec(shape, lambda i: (0, 0))

    flops = 2 * n * (d_in * H1 + H1 * H2 + H2 * d_out)
    bytes_accessed = (n * d_in * 4 + n * d_out * 4
                      + (d_in * H1 + H1 * H2 + H2 * d_out) * 2
                      + (H1 + H2 + d_out) * 4)

    return pl.pallas_call(
        mlp_kernel,
        out_shape=jax.ShapeDtypeStruct((n, d_out), jnp.float32),
        grid=grid,
        in_specs=[
            pl.BlockSpec((tile_n, d_in), lambda i: (i, 0)),   # streamed x tile
            const((d_in, H1)), const((1, H1)),
            const((H1, H2)), const((1, H2)),
            const((H2, d_out)), const((1, d_out)),
        ],
        out_specs=pl.BlockSpec((tile_n, d_out), lambda i: (i, 0)),
        compiler_params=pltpu.CompilerParams(
            dimension_semantics=("parallel",),
            vmem_limit_bytes=VMEM_LIMIT_BYTES,
        ),
        cost_estimate=pl.CostEstimate(
            flops=flops, transcendentals=0, bytes_accessed=bytes_accessed),
    )(x, w1f, t1, w2f, t2, w3f, b3)


def fold_params(params):
    """Fold BN scale into the weights (f32 multiply, then bf16 cast) — done
    once, outside the per-call hot path."""
    w1, s1, t1, w2, s2, t2, w3, b3 = params
    bf16 = jnp.bfloat16
    return ((w1 * s1).astype(bf16), t1,
            (w2 * s2).astype(bf16), t2,
            w3.astype(bf16), b3)


def make_params(key, d_in, d_out):
    """Deterministically initialize Linear + BatchNorm params and fold BN
    running stats + Linear bias into a per-feature scale/shift."""
    ks = jax.random.split(key, 16)

    def linear(kw, kb, fan_in, fan_out):
        bound = 1.0 / jnp.sqrt(fan_in)
        w = jax.random.uniform(kw, (fan_in, fan_out), jnp.float32, -bound, bound)
        b = jax.random.uniform(kb, (1, fan_out), jnp.float32, -bound, bound)
        return w, b

    def bn(kg, kb, km, kv, dim):
        gamma = 1.0 + 0.1 * jax.random.normal(kg, (1, dim), jnp.float32)
        beta = 0.1 * jax.random.normal(kb, (1, dim), jnp.float32)
        run_mean = 0.1 * jax.random.normal(km, (1, dim), jnp.float32)
        run_var = jax.random.uniform(kv, (1, dim), jnp.float32, 0.5, 1.5)
        return gamma, beta, run_mean, run_var

    w1, b1 = linear(ks[0], ks[1], d_in, H1)
    g1, be1, m1, v1 = bn(ks[2], ks[3], ks[4], ks[5], H1)
    w2, b2 = linear(ks[6], ks[7], H1, H2)
    g2, be2, m2, v2 = bn(ks[8], ks[9], ks[10], ks[11], H2)
    w3, b3 = linear(ks[12], ks[13], H2, d_out)

    #   y = ((x@W + b) - mean)/sqrt(var+eps) * gamma + beta = (x@W)*s + t
    s1 = g1 / jnp.sqrt(v1 + BN_EPS)
    t1 = (b1 - m1) * s1 + be1
    s2 = g2 / jnp.sqrt(v2 + BN_EPS)
    t2 = (b2 - m2) * s2 + be2

    return (w1, s1, t1, w2, s2, t2, w3, b3)


def reference_forward(x, folded_params):
    """Pure-JAX reference mirroring the kernel's bf16-operand / f32-acc math."""
    w1f, t1, w2f, t2, w3f, b3 = folded_params
    bf16 = jnp.bfloat16
    z1 = jnp.dot(x.astype(bf16), w1f, preferred_element_type=jnp.float32)
    h1 = _leaky_relu(z1 + t1)
    z2 = jnp.dot(h1.astype(bf16), w2f, preferred_element_type=jnp.float32)
    h2 = _leaky_relu(z2 + t2)
    z3 = jnp.dot(h2.astype(bf16), w3f, preferred_element_type=jnp.float32)
    return z3 + b3


def reference_forward_f32(x, params):
    """Full-precision eval-mode reference (matches the torch module math)."""
    w1, s1, t1, w2, s2, t2, w3, b3 = params
    h1 = _leaky_relu((x @ w1) * s1 + t1)
    h2 = _leaky_relu((h1 @ w2) * s2 + t2)
    return h2 @ w3 + b3


if __name__ == "__main__":
    D_IN, D_OUT, N = 32, 16, 8

    key = jax.random.PRNGKey(0)
    k_x, k_p = jax.random.split(key)
    x = jax.random.normal(k_x, (N, D_IN), jnp.float32)
    params = make_params(k_p, D_IN, D_OUT)
    folded = fold_params(params)

    out = experiment_condition_forward(x, folded)
    out = jax.block_until_ready(out)
    assert out.shape == (N, D_OUT)

    # Tight check vs. bf16-mirrored reference (same operand precision).
    ref_bf16 = reference_forward(x, folded)
    assert jnp.allclose(out, ref_bf16, atol=2e-3, rtol=2e-3)

    # Loose sanity check vs. full-f32 eval-mode math.
    ref_f32 = reference_forward_f32(x, params)
    assert jnp.allclose(out, ref_f32, atol=5e-2, rtol=5e-2)

    print("KERNEL_OK")
</pallas_src>

<mosaic_0001>
module attributes {stable_mosaic.version = 11 : i64} {
  func.func @mlp_kernel(%arg0: i32, %arg1: memref<8x32xf32, #tpu.memory_space<vmem>>, %arg2: memref<32x128xbf16, #tpu.memory_space<vmem>>, %arg3: memref<1x128xf32, #tpu.memory_space<vmem>>, %arg4: memref<128x256xbf16, #tpu.memory_space<vmem>>, %arg5: memref<1x256xf32, #tpu.memory_space<vmem>>, %arg6: memref<256x16xbf16, #tpu.memory_space<vmem>>, %arg7: memref<1x16xf32, #tpu.memory_space<vmem>>, %arg8: memref<8x16xf32, #tpu.memory_space<vmem>>) attributes {dimension_semantics = [#tpu.dimension_semantics<parallel>], iteration_bounds = array<i64: 1>, scalar_prefetch = 0 : i64, scratch_operands = 0 : i64, tpu.core_type = #tpu.core_type<tc>, window_params = [{transform_indices = @transform_0, window_bounds = array<i64: 8, 32>}, {pipeline_mode = #tpu.pipeline_mode<synchronous>, transform_indices = @transform_1, window_bounds = array<i64: 32, 128>}, {pipeline_mode = #tpu.pipeline_mode<synchronous>, transform_indices = @transform_2, window_bounds = array<i64: 1, 128>}, {pipeline_mode = #tpu.pipeline_mode<synchronous>, transform_indices = @transform_3, window_bounds = array<i64: 128, 256>}, {pipeline_mode = #tpu.pipeline_mode<synchronous>, transform_indices = @transform_4, window_bounds = array<i64: 1, 256>}, {pipeline_mode = #tpu.pipeline_mode<synchronous>, transform_indices = @transform_5, window_bounds = array<i64: 256, 16>}, {pipeline_mode = #tpu.pipeline_mode<synchronous>, transform_indices = @transform_6, window_bounds = array<i64: 1, 16>}, {transform_indices = @transform_7, window_bounds = array<i64: 8, 16>}]} {
    %c0 = arith.constant 0 : index
    %c0_0 = arith.constant 0 : index
    %0 = vector.load %arg1[%c0, %c0_0] : memref<8x32xf32, #tpu.memory_space<vmem>>, vector<8x32xf32>
    %1 = arith.truncf %0 : vector<8x32xf32> to vector<8x32xbf16>
    %c0_1 = arith.constant 0 : index
    %c0_2 = arith.constant 0 : index
    %2 = vector.load %arg2[%c0_1, %c0_2] : memref<32x128xbf16, #tpu.memory_space<vmem>>, vector<32x128xbf16>
    %cst = arith.constant dense<0.000000e+00> : vector<8x128xf32>
    %3 = tpu.matmul %1, %2, %cst {dimension_numbers = #tpu.dot_dimension_numbers<[1], [0], [0], [1], [0, 0, 1, 1], [], []>} : vector<8x32xbf16>, vector<32x128xbf16>, vector<8x128xf32> -> vector<8x128xf32>
    %c0_3 = arith.constant 0 : index
    %c0_4 = arith.constant 0 : index
    %4 = vector.load %arg3[%c0_3, %c0_4] : memref<1x128xf32, #tpu.memory_space<vmem>>, vector<1x128xf32>
    %5 = vector.broadcast %4 : vector<1x128xf32> to vector<8x128xf32>
    %6 = arith.addf %3, %5 : vector<8x128xf32>
    %cst_5 = arith.constant 0.00999999977 : f32
    %7 = vector.broadcast %cst_5 : f32 to vector<8x128xf32>
    %8 = arith.mulf %7, %6 : vector<8x128xf32>
    %9 = arith.maximumf %6, %8 : vector<8x128xf32>
    %10 = arith.truncf %9 : vector<8x128xf32> to vector<8x128xbf16>
    %c0_6 = arith.constant 0 : index
    %c0_7 = arith.constant 0 : index
    %11 = vector.load %arg4[%c0_6, %c0_7] : memref<128x256xbf16, #tpu.memory_space<vmem>>, vector<128x256xbf16>
    %cst_8 = arith.constant dense<0.000000e+00> : vector<8x256xf32>
    %12 = tpu.matmul %10, %11, %cst_8 {dimension_numbers = #tpu.dot_dimension_numbers<[1], [0], [0], [1], [0, 0, 1, 1], [], []>} : vector<8x128xbf16>, vector<128x256xbf16>, vector<8x256xf32> -> vector<8x256xf32>
    %c0_9 = arith.constant 0 : index
    %c0_10 = arith.constant 0 : index
    %13 = vector.load %arg5[%c0_9, %c0_10] : memref<1x256xf32, #tpu.memory_space<vmem>>, vector<1x256xf32>
    %14 = vector.broadcast %13 : vector<1x256xf32> to vector<8x256xf32>
    %15 = arith.addf %12, %14 : vector<8x256xf32>
    %cst_11 = arith.constant 0.00999999977 : f32
    %16 = vector.broadcast %cst_11 : f32 to vector<8x256xf32>
    %17 = arith.mulf %16, %15 : vector<8x256xf32>
    %18 = arith.maximumf %15, %17 : vector<8x256xf32>
    %19 = arith.truncf %18 : vector<8x256xf32> to vector<8x256xbf16>
    %c0_12 = arith.constant 0 : index
    %c0_13 = arith.constant 0 : index
    %20 = vector.load %arg6[%c0_12, %c0_13] : memref<256x16xbf16, #tpu.memory_space<vmem>>, vector<256x16xbf16>
    %cst_14 = arith.constant dense<0.000000e+00> : vector<8x16xf32>
    %21 = tpu.matmul %19, %20, %cst_14 {dimension_numbers = #tpu.dot_dimension_numbers<[1], [0], [0], [1], [0, 0, 1, 1], [], []>} : vector<8x256xbf16>, vector<256x16xbf16>, vector<8x16xf32> -> vector<8x16xf32>
    %c0_15 = arith.constant 0 : index
    %c0_16 = arith.constant 0 : index
    %22 = vector.load %arg7[%c0_15, %c0_16] : memref<1x16xf32, #tpu.memory_space<vmem>>, vector<1x16xf32>
    %23 = vector.broadcast %22 : vector<1x16xf32> to vector<8x16xf32>
    %24 = arith.addf %21, %23 : vector<8x16xf32>
    %c0_17 = arith.constant 0 : index
    %c0_18 = arith.constant 0 : index
    %25 = vector.load %arg8[%c0_17, %c0_18] : memref<8x16xf32, #tpu.memory_space<vmem>>, vector<8x16xf32>
    tpu.vector_store %arg8[%c0_17, %c0_18], %24 {strides = array<i32>} : memref<8x16xf32, #tpu.memory_space<vmem>>, vector<8x16xf32>,
    return
  }
  func.func @transform_0(%arg0: i32) -> (i32, i32) {
    %c0_i32 = arith.constant 0 : i32
    %c0_i32_0 = arith.constant 0 : i32
    return %arg0, %c0_i32 : i32, i32
  }
  func.func @transform_1(%arg0: i32) -> (i32, i32) {
    %c0_i32 = arith.constant 0 : i32
    %c0_i32_0 = arith.constant 0 : i32
    %c0_i32_1 = arith.constant 0 : i32
    return %c0_i32, %c0_i32_0 : i32, i32
  }
  func.func @transform_2(%arg0: i32) -> (i32, i32) {
    %c0_i32 = arith.constant 0 : i32
    %c0_i32_0 = arith.constant 0 : i32
    %c0_i32_1 = arith.constant 0 : i32
    return %c0_i32, %c0_i32_0 : i32, i32
  }
  func.func @transform_3(%arg0: i32) -> (i32, i32) {
    %c0_i32 = arith.constant 0 : i32
    %c0_i32_0 = arith.constant 0 : i32
    %c0_i32_1 = arith.constant 0 : i32
    return %c0_i32, %c0_i32_0 : i32, i32
  }
  func.func @transform_4(%arg0: i32) -> (i32, i32) {
    %c0_i32 = arith.constant 0 : i32
    %c0_i32_0 = arith.constant 0 : i32
    %c0_i32_1 = arith.constant 0 : i32
    return %c0_i32, %c0_i32_0 : i32, i32
  }
  func.func @transform_5(%arg0: i32) -> (i32, i32) {
    %c0_i32 = arith.constant 0 : i32
    %c0_i32_0 = arith.constant 0 : i32
    %c0_i32_1 = arith.constant 0 : i32
    return %c0_i32, %c0_i32_0 : i32, i32
  }
  func.func @transform_6(%arg0: i32) -> (i32, i32) {
    %c0_i32 = arith.constant 0 : i32
    %c0_i32_0 = arith.constant 0 : i32
    %c0_i32_1 = arith.constant 0 : i32
    return %c0_i32, %c0_i32_0 : i32, i32
  }
  func.func @transform_7(%arg0: i32) -> (i32, i32) {
    %c0_i32 = arith.constant 0 : i32
    %c0_i32_0 = arith.constant 0 : i32
    return %arg0, %c0_i32 : i32, i32
  }
}

</mosaic_0001>

<bundles_post_ra>
// kernel: tpu_custom_call.1
= control target key start
LH: loop header
LB: loop body
LE: loop exit
PB: predicated region body
PF: predicated region fallthrough
CT: control target
= control target key end

     0   :  { %12 = vsyncpa [#allocation3], 0  ;;  %s782_s0 = inlined_call_operand.hbm [shape: f32[8,32], index: 0, kind: input, shape index: {}]   ;;  %s783_s1 = inlined_call_operand.vmem [shape: bf16[32,128], index: 1, kind: input, shape index: {}]   ;;  %s784_s2 = inlined_call_operand.vmem [shape: f32[1,128], index: 2, kind: input, shape index: {}]   ;;  %s785_s3 = inlined_call_operand.vmem [shape: bf16[128,256], index: 3, kind: input, shape index: {}]   ;;  %s786_s4 = inlined_call_operand.vmem [shape: f32[1,256], index: 4, kind: input, shape index: {}]   ;;  %s787_s5 = inlined_call_operand.vmem [shape: bf16[256,16], index: 5, kind: input, shape index: {}]   ;;  %s788_s6 = inlined_call_operand.vmem [shape: f32[1,16], index: 6, kind: input, shape index: {}]   ;;  %s789_s7 = inlined_call_operand.hbm [shape: f32[8,16], index: 7, kind: output, shape index: {}]  }
   0x1   :  { %13 = vsyncpa [#allocation4], 0  ;;  %s620_s24 = smov [#allocation2]  }
   0x2   :  { %s20_s25 = sshll.u32 %s620_s24, 4  ;;  %s21_s25 = int_to_ptr.vmem [resolvable:$true] %s20_s25 }
   0x3   :  { %s584_s26 = scalar_lea.vmem %s21_s25, 128  ;;  %p589_p1 = scmp.lt.s32.totalorder %s21_s25, %s21_s25 }
   0x4   :  { %p585_p0 = scmp.ne.s32.totalorder %s21_s25, %s584_s26  ;;  %p590_p2 = scmp.lt.s32.totalorder %s584_s26, %s584_s26 }
   0x6   :  { %p591_p3 = por %p590_p2, %p589_p1 }
   0x8   :  { %p592_p4 = pnand %p591_p3, %p585_p0 }
   0xa   :  { %595 = shalt.err (!%p592_p4)
}
   0xb   :  { %23 = dma.hbm_to_vmem [thread:$0]  %s782_s0, 128, %s21_s25, [#allocation3]  }
   0xc   :  { %616 = dma.done.wait [#allocation3], 128  }
   0xd   :  { %617 = vsyncadd [#allocation3], 4294967168  ;;  %v621_v0 = vmov 0.0   ;;  %vm622_vm0 = vmmov 0   ;;  %v534_v1 = vld [vmem:[%s783_s1 + $0x8] sm:$0xff]   ;;  %v535_v2 = vld [vmem:[%s783_s1] sm:$0xff]   ;;  %v130_v47 = vlaneseq }
   0xe   :  { %521 = vmatprep.subr.bf16.mxu0 %v621_v0  ;;  %525 = vmatprep.mubr.msk.bf16.mxu0 %vm622_vm0, %v621_v0  ;;  %v40_v3 = vld [vmem:[#allocation2] sm:$0xff]  ;;  %v536_v4 = vld [vmem:[%s785_s3 + $0x74] ss:$8 sps:$4 sm:$0xff]   ;;  %v538_v5 = vld [vmem:[%s785_s3 + $0x70] ss:$8 sps:$4 sm:$0xff]   ;;  %vm65_vm1 = vcmask 261120  }
   0xf   :  { %522 = vmatpush3.bf16.msra.mxu0 %v534_v1  ;;  %v539_v6 = vld [vmem:[%s785_s3 + $0x64] ss:$8 sps:$4 sm:$0xff]   ;;  %v41_v7 = vpack.c.bf16 %v40_v3, %v40_v3  ;;  %220 = vmatprep.subr.bf16.mxu1 %v536_v4  ;;  %v541_v8 = vld [vmem:[%s785_s3 + $0x60] ss:$8 sps:$4 sm:$0xff]   ;;  %v542_v9 = vld [vmem:[%s785_s3 + $0x54] ss:$8 sps:$4 sm:$0xff]  }
  0x10   :  { %523 = vmatprep.subr.bf16.mxu0 %v621_v0  ;;  %221 = vmatpush1.bf16.msra.mxu1 %v538_v5  ;;  %v544_v10 = vld [vmem:[%s785_s3 + $0x50] ss:$8 sps:$4 sm:$0xff]   ;;  %v545_v11 = vld [vmem:[%s785_s3 + $0x44] ss:$8 sps:$4 sm:$0xff]   ;;  %v547_v12 = vld [vmem:[%s785_s3 + $0x40] ss:$8 sps:$4 sm:$0xff]  }
  0x11   :  { %222 = vmatprep.subr.bf16.mxu1 %v539_v6  ;;  %v548_v13 = vld [vmem:[%s785_s3 + $0x34] ss:$8 sps:$4 sm:$0xff]   ;;  %v550_v14 = vld [vmem:[%s785_s3 + $0x30] ss:$8 sps:$4 sm:$0xff]   ;;  %v551_v15 = vld [vmem:[%s785_s3 + $0x24] ss:$8 sps:$4 sm:$0xff]  }
  0x12   :  { %v553_v16 = vld [vmem:[%s785_s3 + $0x20] ss:$8 sps:$4 sm:$0xff]   ;;  %v554_v17 = vld [vmem:[%s785_s3 + $0x14] ss:$8 sps:$4 sm:$0xff]   ;;  %v556_v18 = vld [vmem:[%s785_s3 + $0x10] ss:$8 sps:$4 sm:$0xff]  }
  0x13   :  { %524 = vmatpush3.bf16.msra.mxu0 %v535_v2  ;;  %v557_v19 = vld [vmem:[%s785_s3 + $0x4] ss:$8 sps:$4 sm:$0xff]   ;;  %v559_v20 = vld [vmem:[%s785_s3] ss:$8 sps:$4 sm:$0xff]   ;;  %v623_v21 = vmov 0   ;;  %v560_v22 = vld [vmem:[%s787_s5 + $0x78] sm:$0xff]  }
  0x14   :  { %223 = vmatpush1.bf16.msra.mxu1 %v541_v8  ;;  %252 = vmatprep.mubr.bf16.mxu1 %v623_v21  ;;  %v561_v23 = vld [vmem:[%s787_s5 + $0x38] sm:$0xff]   ;;  %v562_v24 = vld [vmem:[%s787_s5 + $0x70] sm:$0xff]   ;;  %v564_v26 = vld [vmem:[%s787_s5 + $0x68] sm:$0xff]   ;;  %v131_v48 = vshrl.u32 %v130_v47, 7  ;;  %s624_s23 = smov [#allocation5]   ;;  %vm442_vm2 = vcmask 130048  }
  0x15   :  { %224 = vmatprep.subr.bf16.mxu1 %v542_v9  ;;  %499 = vmatprep.subr.bf16.mxu0 %v560_v22  ;;  %v563_v25 = vld [vmem:[%s787_s5 + $0x30] sm:$0xff]   ;;  %v565_v27 = vld [vmem:[%s787_s5 + $0x28] sm:$0xff]   ;;  %v566_v28 = vld [vmem:[%s787_s5 + $0x60] sm:$0xff]   ;;  %s450_s24 = sshll.u32 %s624_s23, 4  ;;  %s451_s24 = int_to_ptr.vmem [resolvable:$true] %s450_s24 }
  0x16   :  { %526 = vmatmul.mubr.msk.bf16.vlgmr.msra.gmra.mxu0 %vm65_vm1, %v41_v7  ;;  %v567_v29 = vld [vmem:[%s787_s5 + $0x20] sm:$0xff]   ;;  %v568_v30 = vld [vmem:[%s787_s5 + $0x58] sm:$0xff]   ;;  %v570_v41 = vld [vmem:[%s787_s5 + $0x50] sm:$0xff]   ;;  %v132_v49 = vsub.s32 0, %v131_v48  ;;  %v136_v51 = vsub.s32 1, %v131_v48  ;;  %s596_s25 = scalar_lea.vmem %s451_s24, 128  ;;  %p601_p6 = scmp.lt.s32.totalorder %s451_s24, %s451_s24 }
  0x17   :  { %500 = vmatpush3.bf16.msra.mxu0 %v561_v23  ;;  %v569_v31 = vld [vmem:[%s787_s5 + $0x18] sm:$0xff]   ;;  %v459_v32 = vld [vmem:[%s784_s2] ss:$0 sm:$0xff]  ;;  %v571_v42 = vld [vmem:[%s787_s5 + $0x10] sm:$0xff]   ;;  %p597_p5 = scmp.ne.s32.totalorder %s451_s24, %s596_s25  ;;  %p602_p7 = scmp.lt.s32.totalorder %s596_s25, %s596_s25 }
  0x18   :  { %225 = vmatpush1.bf16.msra.mxu1 %v544_v10  ;;  %501 = vmatprep.subr.bf16.mxu0 %v562_v24  ;;  %v572_v43 = vld [vmem:[%s787_s5 + $0x48] sm:$0xff]   ;;  %v574_v45 = vld [vmem:[%s787_s5 + $0x40] sm:$0xff]  }
  0x19   :  { %226 = vmatprep.subr.bf16.mxu1 %v545_v11  ;;  %v573_v44 = vld [vmem:[%s787_s5 + $0x8] sm:$0xff]   ;;  %v575_v46 = vld [vmem:[%s787_s5] sm:$0xff]   ;;  %p603_p8 = por %p602_p7, %p601_p6 }
  0x1a   :  { %v128_v50 = vld [vmem:[%s786_s4] sm:$0x3] }
  0x1b   :  { %502 = vmatpush3.bf16.msra.mxu0 %v563_v25  ;;  %v133_v52 = vrot.slane %v128_v50, %v132_v49  ;;  %v137_v53 = vrot.slane %v128_v50, %v136_v51  ;;  %v479_v3 = vld [vmem:[%s788_s6] ss:$0 sm:$0xff]  ;;  %p604_p9 = pnand %p603_p8, %p597_p5 }
  0x1c   :  { %227 = vmatpush1.bf16.msra.mxu1 %v547_v12  ;;  %503 = vmatprep.subr.bf16.mxu0 %v564_v26 }
  0x1d   :  { %228 = vmatprep.subr.bf16.mxu1 %v548_v13 }
  0x1f   :  { %504 = vmatpush3.bf16.msra.mxu0 %v565_v27 }
  0x20   :  { %229 = vmatpush1.bf16.msra.mxu1 %v550_v14  ;;  %505 = vmatprep.subr.bf16.mxu0 %v566_v28 }
  0x21   :  { %230 = vmatprep.subr.bf16.mxu1 %v551_v15 }
  0x23   :  { %506 = vmatpush3.bf16.msra.mxu0 %v567_v29 }
  0x24   :  { %231 = vmatpush1.bf16.msra.mxu1 %v553_v16  ;;  %507 = vmatprep.subr.bf16.mxu0 %v568_v30 }
  0x25   :  { %232 = vmatprep.subr.bf16.mxu1 %v554_v17 }
  0x27   :  { %508 = vmatpush3.bf16.msra.mxu0 %v569_v31 }
  0x28   :  { %233 = vmatpush1.bf16.msra.mxu1 %v556_v18  ;;  %509 = vmatprep.subr.bf16.mxu0 %v570_v41 }
  0x29   :  { %234 = vmatprep.subr.bf16.mxu1 %v557_v19 }
  0x2b   :  { %510 = vmatpush3.bf16.msra.mxu0 %v571_v42 }
  0x2c   :  { %235 = vmatpush1.bf16.msra.mxu1 %v559_v20  ;;  %511 = vmatprep.subr.bf16.mxu0 %v572_v43 }
  0x2f   :  { %512 = vmatpush3.bf16.msra.mxu0 %v573_v44 }
  0x30   :  { %513 = vmatprep.subr.bf16.mxu0 %v574_v45 }
  0x33   :  { %514 = vmatpush3.bf16.msra.mxu0 %v575_v46 }
  0xd6   :  { %v103_v33 = vpop.f32.mrf.mxu0 }
  0xd7   :  { %v104_v34 = vadd.f32 %v459_v32, %v103_v33 }
  0xd8   :  { %v527_v35 = vpop.f32.mrf.mxu0 }
  0xd9   :  { %v109_v36 = vmul.f32 0.01, %v104_v34 }
  0xda   :  { %v106_v37 = vpop.f32.mrf.mxu0 }
  0xdb   :  { %v110_v38 = vmax.f32 %v104_v34, %v109_v36 }
  0xdc   :  { %v528_v39 = vpop.f32.mrf.mxu0 }
  0xdd   :  { %v111_v40 = vpack.c.bf16 %v110_v38, %v110_v38 }
  0xdf   :  { %253 = vmatmul.mubr.bf16.vlgmr.msra.gmra.mxu1 %v111_v40 }
 0x19f   :  { %v254_v54 = vpop.f32.mrf.mxu1 }
 0x1a0   :  { %v255_v55 = vadd.f32 %v254_v54, %v133_v52 }
 0x1a1   :  { %v256_v56 = vpop.f32.mrf.mxu1 }
 0x1a2   :  { %v261_v57 = vmul.f32 0.01, %v255_v55  ;;  %v257_v58 = vadd.f32 %v256_v56, %v137_v53 }
 0x1a3   :  { %v258_v59 = vpop.f32.mrf.mxu1 }
 0x1a4   :  { %v262_v60 = vmul.f32 0.01, %v257_v58  ;;  %v263_v61 = vmax.f32 %v255_v55, %v261_v57 }
 0x1a5   :  { %v259_v62 = vpop.f32.mrf.mxu1 }
 0x1a6   :  { %v264_v63 = vmax.f32 %v257_v58, %v262_v60  ;;  %v265_v1 = vpack.c.bf16 %v263_v61, %v263_v61 }
 0x1a8   :  { %v266_v0 = vpack.c.bf16 %v264_v63, %v264_v63 }
 0x1aa   :  { %434 = vmatprep.mubr.bf16.mxu0 %v266_v0 }
 0x1ab   :  { %435 = vmatmul.mubr.bf16.vlgmr.msra.gmra.mxu0 %v265_v1 }
 0x26b   :  { %v515_v2 = vpop.f32.mrf.mxu0 }
 0x26d   :  { %v516_v4 = vpop.f32.mrf.mxu0 }
 0x26e   :  { %v517_v5 = vadd.f32 %v516_v4, %v515_v2 }
 0x26f   :  { %v518_v6 = vpop.f32.mrf.mxu0 }
 0x270   :  { %v437_v7 = vadd.f32 %v517_v5, %v479_v3 }
 0x271   :  { %v519_v8 = vpop.f32.mrf.mxu0 }
 0x272   :  { %443 = vst.msk [vmem:[#allocation5] sm:$0xff] %vm442_vm2, %v437_v7 }
 0x273   :  { %607 = shalt.err (!%p604_p9)
}
 0x274   :  { %453 = dma.vmem_to_hbm [thread:$0]  %s451_s24, 128, %s789_s7, [#allocation4]  }
 0x275   :  { %618 = dma.done.wait [#allocation4], 128  }
 0x276   :  { %619 = vsyncadd [#allocation4], 4294967168 }
 0x277   :  { %457 = vsyncpa [#allocation3], 1 }
 0x278   :  { %458 = vsyncpa [#allocation4], 1 }

</bundles_post_ra>
